<compile_context>
chip_gen: v6e
topology: v6e:2x2x1
jax: 0.10.0
libtpu: 0.0.40
codegen_flags: <defaults>
</compile_context>

<pallas_src>
import functools
import math

import jax
import jax.numpy as jnp
from jax.experimental import pallas as pl


LANE = 128      # lane width: all feature dims padded to a multiple of this
SUBLANE = 8     # sublane width: batch dim padded to a multiple of this


def _round_up(n, m):
    return -(-n // m) * m


def policy_net_kernel(x_ref, w_ref, b_ref, o_ref,
                      *, num_layers, valid_rows, padded_rows):
    """Fused 5x Linear (tanh on the first 4) + softmax over axis 0.

    x_ref:  (Bp, P)      bf16
    w_ref:  (L,  P, P)   bf16   (stacked, zero-padded weights)
    b_ref:  (L,  1, P)   f32    (stacked, zero-padded biases)
    o_ref:  (Bp, P)      f32
    Zero padding is semantically inert: padded hidden units stay at tanh(0)=0,
    padded output columns are sliced away in the wrapper.
    """
    h = x_ref[...]                                     # bf16 (Bp, P)
    logits = None
    for i in range(num_layers):                        # static unroll (5 layers)
        acc = jnp.dot(h, w_ref[i],
                      preferred_element_type=jnp.float32) + b_ref[i]
        if i < num_layers - 1:
            # tanh in f32 (accuracy), repack to bf16 for the next MXU matmul.
            h = jnp.tanh(acc).astype(jnp.bfloat16)
        else:
            logits = acc                               # f32 (Bp, P)

    # Mask padded batch rows out of the dim=0 softmax — only when padding exists
    # (valid_rows / padded_rows are static, so this is a trace-time branch).
    if valid_rows < padded_rows:
        row_ids = jax.lax.broadcasted_iota(jnp.int32, logits.shape, 0)
        logits = jnp.where(row_ids < valid_rows, logits, jnp.float32(-1e30))

    # Softmax over dim=0 (the batch axis) — matches F.softmax(..., dim=0).
    m = jnp.max(logits, axis=0, keepdims=True)
    e = jnp.exp(logits - m)
    denom = jnp.sum(e, axis=0, keepdims=True)
    # Exact division: denom is a single (1, P) vector, so exactness is ~free and
    # keeps each column's probabilities summing to 1 (important for log-probs).
    o_ref[...] = (e / denom).astype(o_ref.dtype)


def prepare_params(params):
    """One-time preparation (do this ONCE and reuse across rollout steps).

    params: list of 5 (W (in, out) f32, b (1, out) f32).
    Returns (w_stack (L,P,P) bf16, b_stack (L,1,P) f32, meta).
    """
    dims = [params[0][0].shape[0]] + [w.shape[1] for (w, _) in params]
    P = _round_up(max(dims), LANE)

    ws, bs = [], []
    for (w, b) in params:
        w = jnp.asarray(w, jnp.float32)
        b = jnp.asarray(b, jnp.float32).reshape(1, -1)
        w_p = jnp.pad(w, ((0, P - w.shape[0]), (0, P - w.shape[1])))
        b_p = jnp.pad(b, ((0, 0), (0, P - b.shape[1])))
        ws.append(w_p.astype(jnp.bfloat16))
        bs.append(b_p)
    w_stack = jnp.stack(ws)            # (L, P, P) bf16
    b_stack = jnp.stack(bs)            # (L, 1, P) f32

    meta = {
        "num_layers": len(params),
        "P": P,
        "in_dim": params[0][0].shape[0],
        "out_dim": params[-1][0].shape[1],
    }
    return w_stack, b_stack, meta


def policy_network_forward(x, prepared):
    """x: (B, input_shp).  prepared: output of prepare_params(params)."""
    w_stack, b_stack, meta = prepared
    L, P = meta["num_layers"], meta["P"]
    out_dim = meta["out_dim"]

    B, in_dim = x.shape
    assert in_dim == meta["in_dim"]
    Bp = _round_up(B, SUBLANE)

    if x.dtype != jnp.float32:
        x = x.astype(jnp.float32)
    x_p = jnp.pad(x, ((0, Bp - B), (0, P - in_dim))).astype(jnp.bfloat16)

    kernel = functools.partial(policy_net_kernel,
                               num_layers=L, valid_rows=B, padded_rows=Bp)

    y_padded = pl.pallas_call(
        kernel,
        out_shape=jax.ShapeDtypeStruct((Bp, P), jnp.float32),
        grid=(),
        in_specs=[
            pl.BlockSpec((Bp, P), lambda: (0, 0)),
            pl.BlockSpec((L, P, P), lambda: (0, 0, 0)),
            pl.BlockSpec((L, 1, P), lambda: (0, 0, 0)),
        ],
        out_specs=pl.BlockSpec((Bp, P), lambda: (0, 0)),
    )(x_p, w_stack, b_stack)

    # Slice away lane / sublane padding in the wrapper (cheap XLA slice).
    return y_padded[:B, :out_dim]


def init_linear(key, in_features, out_features):
    """Deterministic init mimicking torch.nn.Linear defaults."""
    kw, kb = jax.random.split(key)
    bound = 1.0 / math.sqrt(in_features)
    # stored as (in, out) so the kernel can do x @ W  (== torch x @ W_t.T)
    w = jax.random.uniform(kw, (in_features, out_features),
                           minval=-bound, maxval=bound, dtype=jnp.float32)
    b = jax.random.uniform(kb, (1, out_features),
                           minval=-bound, maxval=bound, dtype=jnp.float32)
    return w, b


def reference_forward(x, params):
    """Pure-JAX f32 reference with the PyTorch module's semantics."""
    h = x
    for (w, b) in params[:-1]:
        h = jnp.tanh(h @ w + b)
    logits = h @ params[-1][0] + params[-1][1]
    return jax.nn.softmax(logits, axis=0)


if __name__ == "__main__":
    # Small shapes consistent with the module's __init__ signature.
    B = 8
    input_shp = 16
    num_neurons_0 = 32
    num_neurons_1 = 32
    num_neurons_2 = 32
    num_neurons_3 = 32
    output_shp = 8

    key = jax.random.PRNGKey(0)
    keys = jax.random.split(key, 6)

    dims = [input_shp, num_neurons_0, num_neurons_1,
            num_neurons_2, num_neurons_3, output_shp]
    params = [init_linear(keys[i], dims[i], dims[i + 1]) for i in range(5)]

    x = jax.random.normal(keys[5], (B, input_shp), dtype=jnp.float32)

    # One-time parameter preparation (reused across rollout steps).
    prepared = prepare_params(params)

    y = policy_network_forward(x, prepared)
    jax.block_until_ready(y)

    # Correctness check vs pure-JAX f32 reference (bf16 weights/activations in
    # the matmuls => slightly loosened tolerance on the values themselves).
    y_ref = reference_forward(x, params)
    assert y.shape == (B, output_shp)
    assert jnp.allclose(y, y_ref, atol=2e-2, rtol=2e-2), "mismatch vs reference"
    # softmax over dim=0: columns sum to 1 (exact division => tight tolerance)
    assert jnp.allclose(jnp.sum(y, axis=0), jnp.ones((output_shp,)), atol=1e-4)

    print("KERNEL_OK")
</pallas_src>

<mosaic_0001>
module attributes {stable_mosaic.version = 11 : i64} {
  func.func @policy_net_kernel(%arg0: memref<8x128xbf16, #tpu.memory_space<vmem>>, %arg1: memref<5x128x128xbf16, #tpu.memory_space<vmem>>, %arg2: memref<5x1x128xf32, #tpu.memory_space<vmem>>, %arg3: memref<8x128xf32, #tpu.memory_space<vmem>>) attributes {dimension_semantics = [], scalar_prefetch = 0 : i64, scratch_operands = 0 : i64, tpu.core_type = #tpu.core_type<tc>} {
    %c0 = arith.constant 0 : index
    %c0_0 = arith.constant 0 : index
    %0 = vector.load %arg0[%c0, %c0_0] : memref<8x128xbf16, #tpu.memory_space<vmem>>, vector<8x128xbf16>
    %c0_1 = arith.constant 0 : index
    %c0_2 = arith.constant 0 : index
    %c0_3 = arith.constant 0 : index
    %1 = vector.load %arg1[%c0_1, %c0_2, %c0_3] : memref<5x128x128xbf16, #tpu.memory_space<vmem>>, vector<1x128x128xbf16>
    %2 = vector.shape_cast %1 : vector<1x128x128xbf16> to vector<128x128xbf16>
    %cst = arith.constant dense<0.000000e+00> : vector<8x128xf32>
    %3 = tpu.matmul %0, %2, %cst {dimension_numbers = #tpu.dot_dimension_numbers<[1], [0], [0], [1], [0, 0, 1, 1], [], []>} : vector<8x128xbf16>, vector<128x128xbf16>, vector<8x128xf32> -> vector<8x128xf32>
    %c0_4 = arith.constant 0 : index
    %c0_5 = arith.constant 0 : index
    %c0_6 = arith.constant 0 : index
    %4 = vector.load %arg2[%c0_4, %c0_5, %c0_6] : memref<5x1x128xf32, #tpu.memory_space<vmem>>, vector<1x1x128xf32>
    %5 = vector.shape_cast %4 : vector<1x1x128xf32> to vector<1x128xf32>
    %6 = vector.broadcast %5 : vector<1x128xf32> to vector<8x128xf32>
    %7 = arith.addf %3, %6 : vector<8x128xf32>
    %8 = math.tanh %7 : vector<8x128xf32>
    %9 = arith.truncf %8 : vector<8x128xf32> to vector<8x128xbf16>
    %c1 = arith.constant 1 : index
    %c0_7 = arith.constant 0 : index
    %c0_8 = arith.constant 0 : index
    %10 = vector.load %arg1[%c1, %c0_7, %c0_8] : memref<5x128x128xbf16, #tpu.memory_space<vmem>>, vector<1x128x128xbf16>
    %11 = vector.shape_cast %10 : vector<1x128x128xbf16> to vector<128x128xbf16>
    %cst_9 = arith.constant dense<0.000000e+00> : vector<8x128xf32>
    %12 = tpu.matmul %9, %11, %cst_9 {dimension_numbers = #tpu.dot_dimension_numbers<[1], [0], [0], [1], [0, 0, 1, 1], [], []>} : vector<8x128xbf16>, vector<128x128xbf16>, vector<8x128xf32> -> vector<8x128xf32>
    %c1_10 = arith.constant 1 : index
    %c0_11 = arith.constant 0 : index
    %c0_12 = arith.constant 0 : index
    %13 = vector.load %arg2[%c1_10, %c0_11, %c0_12] : memref<5x1x128xf32, #tpu.memory_space<vmem>>, vector<1x1x128xf32>
    %14 = vector.shape_cast %13 : vector<1x1x128xf32> to vector<1x128xf32>
    %15 = vector.broadcast %14 : vector<1x128xf32> to vector<8x128xf32>
    %16 = arith.addf %12, %15 : vector<8x128xf32>
    %17 = math.tanh %16 : vector<8x128xf32>
    %18 = arith.truncf %17 : vector<8x128xf32> to vector<8x128xbf16>
    %c2 = arith.constant 2 : index
    %c0_13 = arith.constant 0 : index
    %c0_14 = arith.constant 0 : index
    %19 = vector.load %arg1[%c2, %c0_13, %c0_14] : memref<5x128x128xbf16, #tpu.memory_space<vmem>>, vector<1x128x128xbf16>
    %20 = vector.shape_cast %19 : vector<1x128x128xbf16> to vector<128x128xbf16>
    %cst_15 = arith.constant dense<0.000000e+00> : vector<8x128xf32>
    %21 = tpu.matmul %18, %20, %cst_15 {dimension_numbers = #tpu.dot_dimension_numbers<[1], [0], [0], [1], [0, 0, 1, 1], [], []>} : vector<8x128xbf16>, vector<128x128xbf16>, vector<8x128xf32> -> vector<8x128xf32>
    %c2_16 = arith.constant 2 : index
    %c0_17 = arith.constant 0 : index
    %c0_18 = arith.constant 0 : index
    %22 = vector.load %arg2[%c2_16, %c0_17, %c0_18] : memref<5x1x128xf32, #tpu.memory_space<vmem>>, vector<1x1x128xf32>
    %23 = vector.shape_cast %22 : vector<1x1x128xf32> to vector<1x128xf32>
    %24 = vector.broadcast %23 : vector<1x128xf32> to vector<8x128xf32>
    %25 = arith.addf %21, %24 : vector<8x128xf32>
    %26 = math.tanh %25 : vector<8x128xf32>
    %27 = arith.truncf %26 : vector<8x128xf32> to vector<8x128xbf16>
    %c3 = arith.constant 3 : index
    %c0_19 = arith.constant 0 : index
    %c0_20 = arith.constant 0 : index
    %28 = vector.load %arg1[%c3, %c0_19, %c0_20] : memref<5x128x128xbf16, #tpu.memory_space<vmem>>, vector<1x128x128xbf16>
    %29 = vector.shape_cast %28 : vector<1x128x128xbf16> to vector<128x128xbf16>
    %cst_21 = arith.constant dense<0.000000e+00> : vector<8x128xf32>
    %30 = tpu.matmul %27, %29, %cst_21 {dimension_numbers = #tpu.dot_dimension_numbers<[1], [0], [0], [1], [0, 0, 1, 1], [], []>} : vector<8x128xbf16>, vector<128x128xbf16>, vector<8x128xf32> -> vector<8x128xf32>
    %c3_22 = arith.constant 3 : index
    %c0_23 = arith.constant 0 : index
    %c0_24 = arith.constant 0 : index
    %31 = vector.load %arg2[%c3_22, %c0_23, %c0_24] : memref<5x1x128xf32, #tpu.memory_space<vmem>>, vector<1x1x128xf32>
    %32 = vector.shape_cast %31 : vector<1x1x128xf32> to vector<1x128xf32>
    %33 = vector.broadcast %32 : vector<1x128xf32> to vector<8x128xf32>
    %34 = arith.addf %30, %33 : vector<8x128xf32>
    %35 = math.tanh %34 : vector<8x128xf32>
    %36 = arith.truncf %35 : vector<8x128xf32> to vector<8x128xbf16>
    %c4 = arith.constant 4 : index
    %c0_25 = arith.constant 0 : index
    %c0_26 = arith.constant 0 : index
    %37 = vector.load %arg1[%c4, %c0_25, %c0_26] : memref<5x128x128xbf16, #tpu.memory_space<vmem>>, vector<1x128x128xbf16>
    %38 = vector.shape_cast %37 : vector<1x128x128xbf16> to vector<128x128xbf16>
    %cst_27 = arith.constant dense<0.000000e+00> : vector<8x128xf32>
    %39 = tpu.matmul %36, %38, %cst_27 {dimension_numbers = #tpu.dot_dimension_numbers<[1], [0], [0], [1], [0, 0, 1, 1], [], []>} : vector<8x128xbf16>, vector<128x128xbf16>, vector<8x128xf32> -> vector<8x128xf32>
    %c4_28 = arith.constant 4 : index
    %c0_29 = arith.constant 0 : index
    %c0_30 = arith.constant 0 : index
    %40 = vector.load %arg2[%c4_28, %c0_29, %c0_30] : memref<5x1x128xf32, #tpu.memory_space<vmem>>, vector<1x1x128xf32>
    %41 = vector.shape_cast %40 : vector<1x1x128xf32> to vector<1x128xf32>
    %42 = vector.broadcast %41 : vector<1x128xf32> to vector<8x128xf32>
    %43 = arith.addf %39, %42 : vector<8x128xf32>
    %cst_31 = arith.constant dense<0xFF800000> : vector<128xf32>
    %44 = vector.multi_reduction <maximumf>, %43, %cst_31 [0] : vector<8x128xf32> to vector<128xf32>
    %45 = vector.shape_cast %44 : vector<128xf32> to vector<1x128xf32>
    %46 = vector.broadcast %45 : vector<1x128xf32> to vector<8x128xf32>
    %47 = arith.subf %43, %46 : vector<8x128xf32>
    %48 = math.exp %47 : vector<8x128xf32>
    %cst_32 = arith.constant dense<0.000000e+00> : vector<128xf32>
    %49 = vector.multi_reduction <add>, %48, %cst_32 [0] : vector<8x128xf32> to vector<128xf32>
    %50 = vector.shape_cast %49 : vector<128xf32> to vector<1x128xf32>
    %51 = vector.broadcast %50 : vector<1x128xf32> to vector<8x128xf32>
    %52 = arith.divf %48, %51 : vector<8x128xf32>
    %c0_33 = arith.constant 0 : index
    %c0_34 = arith.constant 0 : index
    %53 = vector.load %arg3[%c0_33, %c0_34] : memref<8x128xf32, #tpu.memory_space<vmem>>, vector<8x128xf32>
    tpu.vector_store %arg3[%c0_33, %c0_34], %52 {strides = array<i32>} : memref<8x128xf32, #tpu.memory_space<vmem>>, vector<8x128xf32>,
    return
  }
}

</mosaic_0001>

<bundles_post_ra>
// kernel: tpu_custom_call.1
= control target key start
LH: loop header
LB: loop body
LE: loop exit
PB: predicated region body
PF: predicated region fallthrough
CT: control target
= control target key end

     0   :  { %8 = vsyncpa [#allocation3], 0  ;;  %s1091_s0 = inlined_call_operand.hbm [shape: bf16[8,128], index: 0, kind: input, shape index: {}]   ;;  %s1092_s1 = inlined_call_operand.hbm [shape: bf16[5,128,128], index: 1, kind: input, shape index: {}]   ;;  %s1093_s2 = inlined_call_operand.hbm [shape: f32[5,1,128], index: 2, kind: input, shape index: {}]   ;;  %s1094_s3 = inlined_call_operand.hbm [shape: f32[8,128], index: 3, kind: output, shape index: {}]  }
   0x1   :  { %9 = vsyncpa [#allocation6], 0 }
   0x2   :  { %10 = vsyncpa [#allocation4], 0  ;;  %s999_s12 = smov [#allocation5]  }
   0x3   :  { %s26_s13 = sshll.u32 %s999_s12, 4  ;;  %s27_s13 = int_to_ptr.vmem [resolvable:$true] %s26_s13 }
   0x4   :  { %s921_s14 = scalar_lea.vmem %s27_s13, 5120  ;;  %p926_p1 = scmp.lt.s32.totalorder %s27_s13, %s27_s13 }
   0x5   :  { %p922_p0 = scmp.ne.s32.totalorder %s27_s13, %s921_s14  ;;  %p927_p2 = scmp.lt.s32.totalorder %s921_s14, %s921_s14 }
   0x7   :  { %p928_p3 = por %p927_p2, %p926_p1 }
   0x9   :  { %p929_p4 = pnand %p928_p3, %p922_p0 }
   0xb   :  { %932 = shalt.err (!%p929_p4)
}
   0xc   :  { %s1000_s15 = smov 64   ;;  %s1001_s16 = smov 4  }
   0xd   :  { %32 = dma.hbm_to_vmem [thread:$0]  %s1092_s1, 5120, %s27_s13, [#allocation6], %s1000_s15, %s1000_s15, %s1001_s16  }
   0xe   :  { %s1002_s19 = smov [#allocation2]   ;;  %s1003_s21 = smov [#allocation7]  }
   0xf   :  { %s17_s20 = sshll.u32 %s1002_s19, 4  ;;  %s38_s22 = sshll.u32 %s1003_s21, 4  ;;  %s18_s20 = int_to_ptr.vmem [resolvable:$true] %s17_s20  ;;  %s39_s22 = int_to_ptr.vmem [resolvable:$true] %s38_s22 }
  0x10   :  { %s941_s23 = scalar_lea.vmem %s18_s20, 64  ;;  %p946_p6 = scmp.lt.s32.totalorder %s18_s20, %s18_s20 }
  0x11   :  { %p942_p5 = scmp.ne.s32.totalorder %s18_s20, %s941_s23  ;;  %p947_p7 = scmp.lt.s32.totalorder %s941_s23, %s941_s23 }
  0x13   :  { %p948_p8 = por %p947_p7, %p946_p6 }
  0x15   :  { %p949_p9 = pnand %p948_p8, %p942_p5 }
  0x17   :  { %952 = shalt.err (!%p949_p9)
}
  0x18   :  { %20 = dma.hbm_to_vmem [thread:$0]  %s1091_s0, 64, %s18_s20, [#allocation3]  }
  0x19   :  { %s961_s26 = scalar_lea.vmem %s39_s22, 80  ;;  %s965_s1 = scalar_lea.vmem %s39_s22, 96 }
  0x1a   :  { %p962_p10 = scmp.ne.s32.totalorder %s39_s22, %s961_s26  ;;  %p966_p11 = scmp.lt.s32.totalorder %s39_s22, %s39_s22 }
  0x1b   :  { %p967_p12 = scmp.lt.s32.totalorder %s965_s1, %s961_s26 }
  0x1d   :  { %p968_p13 = por %p967_p12, %p966_p11 }
  0x1f   :  { %p969_p0 = pnand %p968_p13, %p962_p10 }
  0x21   :  { %972 = shalt.err (!%p969_p0)
}
  0x22   :  { %s1004_s27 = smov 16   ;;  %s1005_s28 = smov 1  }
  0x23   :  { %44 = dma.hbm_to_vmem [thread:$0]  %s1093_s2, 80, %s39_s22, [#allocation6], %s1004_s27, %s1004_s27, %s1005_s28  }
  0x24   :  { %993 = dma.done.wait [#allocation3], 64  }
  0x25   :  { %994 = vsyncadd [#allocation3], 4294967232 }
  0x26   :  { %995 = dma.done.wait [#allocation6], 5200  }
  0x27   :  { %996 = vsyncadd [#allocation6], 4294962096  ;;  %v1006_v0 = vmov 0.0   ;;  %vm1007_vm0 = vmmov 0   ;;  %v861_v1 = vld [vmem:[#allocation5 + $0x38] sm:$0xff]   ;;  %v862_v2 = vld [vmem:[#allocation5 + $0x30] sm:$0xff]  }
  0x28   :  { %751 = vmatprep.subr.bf16.mxu0 %v1006_v0  ;;  %767 = vmatprep.mubr.msk.bf16.mxu0 %vm1007_vm0, %v1006_v0  ;;  %v863_v3 = vld [vmem:[#allocation5 + $0x28] sm:$0xff]   ;;  %v869_v4 = vld [vmem:[#allocation5 + $0x78] sm:$0xff]   ;;  %v864_v5 = vld [vmem:[#allocation5 + $0x20] sm:$0xff]   ;;  %s1008_s0 = smov [#allocation8]  }
  0x29   :  { %771 = vmatprep.subr.bf16.mxu1 %v1006_v0  ;;  %787 = vmatprep.mubr.msk.bf16.mxu1 %vm1007_vm0, %v1006_v0  ;;  %v870_v6 = vld [vmem:[#allocation5 + $0x70] sm:$0xff]   ;;  %v865_v7 = vld [vmem:[#allocation5 + $0x18] sm:$0xff]   ;;  %v871_v8 = vld [vmem:[#allocation5 + $0x68] sm:$0xff]   ;;  %s651_s2 = sshll.u32 %s1008_s0, 4  ;;  %s652_s2 = int_to_ptr.vmem [resolvable:$true] %s651_s2 }
  0x2a   :  { %752 = vmatpush3.bf16.msra.mxu0 %v861_v1  ;;  %772 = vmatpush3.bf16.msra.mxu1 %v869_v4  ;;  %v866_v9 = vld [vmem:[#allocation5 + $0x10] sm:$0xff]   ;;  %v867_v10 = vld [vmem:[#allocation5 + $0x8] sm:$0xff]   ;;  %v868_v11 = vld [vmem:[#allocation5] sm:$0xff]   ;;  %s973_s4 = scalar_lea.vmem %s652_s2, 128  ;;  %p978_p2 = scmp.lt.s32.totalorder %s652_s2, %s652_s2 }
  0x2b   :  { %753 = vmatprep.subr.bf16.mxu0 %v1006_v0  ;;  %773 = vmatprep.subr.bf16.mxu1 %v1006_v0  ;;  %v55_v12 = vld [vmem:[#allocation2] sm:$0xf]  ;;  %v872_v13 = vld [vmem:[#allocation5 + $0x60] sm:$0xff]   ;;  %v874_v15 = vld [vmem:[#allocation5 + $0x50] sm:$0xff]   ;;  %p974_p1 = scmp.ne.s32.totalorder %s652_s2, %s973_s4  ;;  %p979_p3 = scmp.lt.s32.totalorder %s973_s4, %s973_s4 }
  0x2c   :  { %v873_v14 = vld [vmem:[#allocation5 + $0x58] sm:$0xff]   ;;  %v875_v16 = vld [vmem:[#allocation5 + $0x48] sm:$0xff]   ;;  %v876_v17 = vld [vmem:[#allocation5 + $0x40] sm:$0xff]  }
  0x2d   :  { %v877_v18 = vld [vmem:[#allocation5 + $0xb8] sm:$0xff]   ;;  %v878_v19 = vld [vmem:[#allocation5 + $0xb0] sm:$0xff]   ;;  %v879_v20 = vld [vmem:[#allocation5 + $0xa8] sm:$0xff]   ;;  %p980_p4 = por %p979_p3, %p978_p2 }
  0x2e   :  { %754 = vmatpush3.bf16.msra.mxu0 %v862_v2  ;;  %774 = vmatpush3.bf16.msra.mxu1 %v870_v6  ;;  %v661_v21 = vld [vmem:[#allocation7] ss:$0 sm:$0xff]  ;;  %v881_v30 = vld [vmem:[#allocation5 + $0x98] sm:$0xff]   ;;  %v882_v31 = vld [vmem:[#allocation5 + $0x90] sm:$0xff]  }
  0x2f   :  { %755 = vmatprep.subr.bf16.mxu0 %v1006_v0  ;;  %775 = vmatprep.subr.bf16.mxu1 %v1006_v0  ;;  %v880_v29 = vld [vmem:[#allocation5 + $0xa0] sm:$0xff]   ;;  %v883_v32 = vld [vmem:[#allocation5 + $0x88] sm:$0xff]   ;;  %v885_v34 = vld [vmem:[#allocation5 + $0xf8] sm:$0xff]   ;;  %p981_p5 = pnand %p980_p4, %p974_p1 }
  0x30   :  { %v884_v33 = vld [vmem:[#allocation5 + $0x80] sm:$0xff]   ;;  %v886_v35 = vld [vmem:[#allocation5 + $0xf0] sm:$0xff]   ;;  %v887_v36 = vld [vmem:[#allocation5 + $0xe8] sm:$0xff]  }
  0x31   :  { %v670_v37 = vld [vmem:[#allocation7 + $0x1] ss:$0 sm:$0xff]  ;;  %v889_v46 = vld [vmem:[#allocation5 + $0xd8] sm:$0xff]   ;;  %v890_v47 = vld [vmem:[#allocation5 + $0xd0] sm:$0xff]  }
  0x32   :  { %756 = vmatpush3.bf16.msra.mxu0 %v863_v3  ;;  %776 = vmatpush3.bf16.msra.mxu1 %v871_v8  ;;  %v888_v45 = vld [vmem:[#allocation5 + $0xe0] sm:$0xff]   ;;  %v891_v48 = vld [vmem:[#allocation5 + $0xc8] sm:$0xff]   ;;  %v893_v50 = vld [vmem:[#allocation5 + $0x138] sm:$0xff]  }
  0x33   :  { %757 = vmatprep.subr.bf16.mxu0 %v1006_v0  ;;  %777 = vmatprep.subr.bf16.mxu1 %v1006_v0  ;;  %v892_v49 = vld [vmem:[#allocation5 + $0xc0] sm:$0xff]   ;;  %v894_v51 = vld [vmem:[#allocation5 + $0x130] sm:$0xff]   ;;  %v895_v52 = vld [vmem:[#allocation5 + $0x128] sm:$0xff]  }
  0x34   :  { %v679_v53 = vld [vmem:[#allocation7 + $0x2] ss:$0 sm:$0xff]  ;;  %v897_v62 = vld [vmem:[#allocation5 + $0x118] sm:$0xff]   ;;  %v898_v63 = vld [vmem:[#allocation5 + $0x110] sm:$0xff]  }
  0x35   :  { %v896_v61 = vld [vmem:[#allocation5 + $0x120] sm:$0xff]   ;;  %v899_v1 = vld [vmem:[#allocation5 + $0x108] sm:$0xff]  }
  0x36   :  { %758 = vmatpush3.bf16.msra.mxu0 %v864_v5  ;;  %778 = vmatpush3.bf16.msra.mxu1 %v872_v13  ;;  %v900_v2 = vld [vmem:[#allocation5 + $0x100] sm:$0xff]  }
  0x37   :  { %759 = vmatprep.subr.bf16.mxu0 %v1006_v0  ;;  %779 = vmatprep.subr.bf16.mxu1 %v1006_v0  ;;  %v688_v3 = vld [vmem:[#allocation7 + $0x3] ss:$0 sm:$0xff] }
  0x3a   :  { %760 = vmatpush3.bf16.msra.mxu0 %v865_v7  ;;  %780 = vmatpush3.bf16.msra.mxu1 %v873_v14 }
  0x3b   :  { %761 = vmatprep.subr.bf16.mxu0 %v1006_v0  ;;  %781 = vmatprep.subr.bf16.mxu1 %v1006_v0 }
  0x3e   :  { %762 = vmatpush3.bf16.msra.mxu0 %v866_v9  ;;  %782 = vmatpush3.bf16.msra.mxu1 %v874_v15 }
  0x3f   :  { %763 = vmatprep.subr.bf16.mxu0 %v1006_v0  ;;  %783 = vmatprep.subr.bf16.mxu1 %v1006_v0 }
  0x42   :  { %764 = vmatpush3.bf16.msra.mxu0 %v867_v10  ;;  %784 = vmatpush3.bf16.msra.mxu1 %v875_v16 }
  0x43   :  { %765 = vmatprep.subr.bf16.mxu0 %v1006_v0  ;;  %785 = vmatprep.subr.bf16.mxu1 %v1006_v0 }
  0x46   :  { %766 = vmatpush3.bf16.msra.mxu0 %v868_v11  ;;  %786 = vmatpush3.bf16.msra.mxu1 %v876_v17  ;;  %v697_v11 = vld [vmem:[#allocation7 + $0x4] ss:$0 sm:$0xff] }
  0x47   :  { %791 = vmatprep.subr.bf16.mxu0 %v1006_v0  ;;  %811 = vmatprep.subr.bf16.mxu1 %v1006_v0 }
  0x49   :  { %768 = vmatmul.mubr.bf16.vlgmr.msra.gmra.mxu0 %v55_v12 }
  0x4a   :  { %807 = vmatprep.mubr.msk.bf16.mxu0 %vm1007_vm0, %v1006_v0  ;;  %792 = vmatpush3.bf16.msra.mxu0 %v877_v18 }
  0x4b   :  { %793 = vmatprep.subr.bf16.mxu0 %v1006_v0 }
  0x4e   :  { %794 = vmatpush3.bf16.msra.mxu0 %v878_v19 }
  0x4f   :  { %795 = vmatprep.subr.bf16.mxu0 %v1006_v0 }
  0x52   :  { %796 = vmatpush3.bf16.msra.mxu0 %v879_v20 }
  0x53   :  { %797 = vmatprep.subr.bf16.mxu0 %v1006_v0 }
  0x56   :  { %798 = vmatpush3.bf16.msra.mxu0 %v880_v29 }
  0x57   :  { %799 = vmatprep.subr.bf16.mxu0 %v1006_v0 }
  0x5a   :  { %800 = vmatpush3.bf16.msra.mxu0 %v881_v30 }
  0x5b   :  { %801 = vmatprep.subr.bf16.mxu0 %v1006_v0 }
  0x5e   :  { %802 = vmatpush3.bf16.msra.mxu0 %v882_v31 }
  0x5f   :  { %803 = vmatprep.subr.bf16.mxu0 %v1006_v0 }
  0x62   :  { %804 = vmatpush3.bf16.msra.mxu0 %v883_v32 }
  0x63   :  { %805 = vmatprep.subr.bf16.mxu0 %v1006_v0 }
  0x66   :  { %806 = vmatpush3.bf16.msra.mxu0 %v884_v33 }
  0x67   :  { %831 = vmatprep.subr.bf16.mxu0 %v1006_v0 }
 0x109   :  { %v161_v22 = vpop.f32.mrf.mxu0 }
 0x10a   :  { %v162_v23 = vadd.f32 %v661_v21, %v161_v22 }
 0x10b   :  { %v769_v24 = vpop.f32.mrf.mxu0 }
 0x10c   :  { %901 = vtanh.f32 %v162_v23 }
 0x10d   :  { %v164_v25 = vpop.f32.mrf.mxu0 }
 0x10f   :  { %v770_v26 = vpop.f32.mrf.mxu0 }
 0x119   :  { %v902_v27 = vpop.eup %901 }
 0x11a   :  { %v168_v28 = vpack.c.bf16 %v902_v27, %v902_v27 }
 0x11c   :  { %788 = vmatmul.mubr.bf16.vlgmr.msra.gmra.mxu1 %v168_v28 }
 0x11d   :  { %827 = vmatprep.mubr.msk.bf16.mxu1 %vm1007_vm0, %v1006_v0  ;;  %812 = vmatpush3.bf16.msra.mxu1 %v885_v34 }
 0x11e   :  { %813 = vmatprep.subr.bf16.mxu1 %v1006_v0 }
 0x121   :  { %814 = vmatpush3.bf16.msra.mxu1 %v886_v35 }
 0x122   :  { %815 = vmatprep.subr.bf16.mxu1 %v1006_v0 }
 0x125   :  { %816 = vmatpush3.bf16.msra.mxu1 %v887_v36 }
 0x126   :  { %817 = vmatprep.subr.bf16.mxu1 %v1006_v0 }
 0x129   :  { %818 = vmatpush3.bf16.msra.mxu1 %v888_v45 }
 0x12a   :  { %819 = vmatprep.subr.bf16.mxu1 %v1006_v0 }
 0x12d   :  { %820 = vmatpush3.bf16.msra.mxu1 %v889_v46 }
 0x12e   :  { %821 = vmatprep.subr.bf16.mxu1 %v1006_v0 }
 0x131   :  { %822 = vmatpush3.bf16.msra.mxu1 %v890_v47 }
 0x132   :  { %823 = vmatprep.subr.bf16.mxu1 %v1006_v0 }
 0x135   :  { %824 = vmatpush3.bf16.msra.mxu1 %v891_v48 }
 0x136   :  { %825 = vmatprep.subr.bf16.mxu1 %v1006_v0 }
 0x139   :  { %826 = vmatpush3.bf16.msra.mxu1 %v892_v49 }
 0x1dc   :  { %v276_v38 = vpop.f32.mrf.mxu1 }
 0x1dd   :  { %v277_v39 = vadd.f32 %v670_v37, %v276_v38 }
 0x1de   :  { %v789_v40 = vpop.f32.mrf.mxu1 }
 0x1df   :  { %903 = vtanh.f32 %v277_v39 }
 0x1e0   :  { %v279_v41 = vpop.f32.mrf.mxu1 }
 0x1e2   :  { %v790_v42 = vpop.f32.mrf.mxu1 }
 0x1ec   :  { %v904_v43 = vpop.eup %903 }
 0x1ed   :  { %v283_v44 = vpack.c.bf16 %v904_v43, %v904_v43 }
 0x1ef   :  { %808 = vmatmul.mubr.bf16.vlgmr.msra.gmra.mxu0 %v283_v44 }
 0x1f0   :  { %847 = vmatprep.mubr.msk.bf16.mxu0 %vm1007_vm0, %v1006_v0  ;;  %832 = vmatpush3.bf16.msra.mxu0 %v893_v50 }
 0x1f1   :  { %833 = vmatprep.subr.bf16.mxu0 %v1006_v0 }
 0x1f4   :  { %834 = vmatpush3.bf16.msra.mxu0 %v894_v51 }
 0x1f5   :  { %835 = vmatprep.subr.bf16.mxu0 %v1006_v0 }
 0x1f8   :  { %836 = vmatpush3.bf16.msra.mxu0 %v895_v52 }
 0x1f9   :  { %837 = vmatprep.subr.bf16.mxu0 %v1006_v0 }
 0x1fc   :  { %838 = vmatpush3.bf16.msra.mxu0 %v896_v61 }
 0x1fd   :  { %839 = vmatprep.subr.bf16.mxu0 %v1006_v0 }
 0x200   :  { %840 = vmatpush3.bf16.msra.mxu0 %v897_v62 }
 0x201   :  { %841 = vmatprep.subr.bf16.mxu0 %v1006_v0 }
 0x204   :  { %842 = vmatpush3.bf16.msra.mxu0 %v898_v63 }
 0x205   :  { %843 = vmatprep.subr.bf16.mxu0 %v1006_v0 }
 0x208   :  { %844 = vmatpush3.bf16.msra.mxu0 %v899_v1 }
 0x209   :  { %845 = vmatprep.subr.bf16.mxu0 %v1006_v0 }
 0x20c   :  { %846 = vmatpush3.bf16.msra.mxu0 %v900_v2 }
 0x2af   :  { %v391_v54 = vpop.f32.mrf.mxu0 }
 0x2b0   :  { %v392_v55 = vadd.f32 %v679_v53, %v391_v54 }
 0x2b1   :  { %v809_v56 = vpop.f32.mrf.mxu0 }
 0x2b2   :  { %905 = vtanh.f32 %v392_v55 }
 0x2b3   :  { %v394_v57 = vpop.f32.mrf.mxu0 }
 0x2b5   :  { %v810_v58 = vpop.f32.mrf.mxu0 }
 0x2bf   :  { %v906_v59 = vpop.eup %905 }
 0x2c0   :  { %v398_v60 = vpack.c.bf16 %v906_v59, %v906_v59 }
 0x2c2   :  { %828 = vmatmul.mubr.bf16.vlgmr.msra.gmra.mxu1 %v398_v60 }
 0x382   :  { %v506_v4 = vpop.f32.mrf.mxu1 }
 0x383   :  { %v507_v5 = vadd.f32 %v688_v3, %v506_v4 }
 0x384   :  { %v829_v6 = vpop.f32.mrf.mxu1 }
 0x385   :  { %907 = vtanh.f32 %v507_v5 }
 0x386   :  { %v509_v7 = vpop.f32.mrf.mxu1 }
 0x388   :  { %v830_v8 = vpop.f32.mrf.mxu1 }
 0x392   :  { %v908_v9 = vpop.eup %907 }
 0x393   :  { %v513_v10 = vpack.c.bf16 %v908_v9, %v908_v9 }
 0x395   :  { %848 = vmatmul.mubr.bf16.vlgmr.msra.gmra.mxu0 %v513_v10 }
 0x455   :  { %v621_v12 = vpop.f32.mrf.mxu0 }
 0x456   :  { %v622_v13 = vadd.f32 %v697_v11, %v621_v12 }
 0x457   :  { %v849_v14 = vpop.f32.mrf.mxu0 }
 0x458   :  { %v627_v15 = vrot.slane %v622_v13, 4 }
 0x459   :  { %v624_v16 = vpop.f32.mrf.mxu0 }
 0x45a   :  { %v628_v17 = vmax.f32 %v622_v13, %v627_v15 }
 0x45b   :  { %v850_v0 = vpop.f32.mrf.mxu0 }
 0x45c   :  { %v629_v18 = vrot.slane %v628_v17, 2 }
 0x45e   :  { %v630_v19 = vmax.f32 %v628_v17, %v629_v18 }
 0x460   :  { %v631_v20 = vrot.slane %v630_v19, 1 }
 0x462   :  { %v632_v21 = vmax.f32 %v630_v19, %v631_v20 }
 0x464   :  { %v633_v22 = vsub.f32 %v622_v13, %v632_v21 }
 0x466   :  { %v634_v23 = vmul.f32 1.442695, %v633_v22 }
 0x468   :  { %909 = vpow2.f32 %v634_v23 }
 0x475   :  { %v910_v24 = vpop.eup %909 }
 0x476   :  { %v636_v25 = vrot.slane %v910_v24, 4 }
 0x478   :  { %v637_v26 = vadd.f32 %v910_v24, %v636_v25 }
 0x47a   :  { %v638_v27 = vrot.slane %v637_v26, 2 }
 0x47c   :  { %v639_v28 = vadd.f32 %v638_v27, %v637_v26 }
 0x47e   :  { %v640_v29 = vrot.slane %v639_v28, 1 }
 0x480   :  { %v641_v30 = vadd.f32 %v640_v29, %v639_v28 }
 0x482   :  { %911 = vrcp.f32 %v641_v30 }
 0x48f   :  { %v912_v31 = vpop.eup %911 }
 0x490   :  { %v643_v32 = vmul.f32 %v912_v31, %v910_v24 }
 0x492   :  { %644 = vst [vmem:[#allocation8] sm:$0xff] %v643_v32 }
 0x493   :  { %984 = shalt.err (!%p981_p5)
}
 0x494   :  { %654 = dma.vmem_to_hbm [thread:$0]  %s652_s2, 128, %s1094_s3, [#allocation4]  }
 0x495   :  { %997 = dma.done.wait [#allocation4], 128  }
 0x496   :  { %998 = vsyncadd [#allocation4], 4294967168 }
 0x497   :  { %658 = vsyncpa [#allocation3], 1 }
 0x498   :  { %659 = vsyncpa [#allocation6], 1 }
 0x499   :  { %660 = vsyncpa [#allocation4], 1 }

</bundles_post_ra>
